<compile_context>
chip_gen: v7x
topology: tpu7x:2x2x1
jax: 0.10.0
libtpu: 0.0.40
codegen_flags: <defaults>
</compile_context>

<pallas_src>
import jax
import jax.numpy as jnp
from jax.experimental import pallas as pl
from jax.experimental.pallas import tpu as pltpu


# ----------------------------- fused Pallas kernel ---------------------------
def _fused_forward_kernel(patches_ref, convw_ref, convb_ref, fcw_ref, fcb_ref,
                          out_ref):
    """Whole TinyConvNet forward, fully VMEM/vreg-resident.

    patches_ref: (K, N*HW)     bf16  im2col patches, K = C*9, fused minor = n-major
    convw_ref:   (OC, K)       bf16  conv weight (rows = output channels)
    convb_ref:   (OC, 1)       f32   conv bias (column vector)
    fcw_ref:     (OC*HW, CLS)  bf16  FC weight, pre-flattened to NCHW-flatten order
    fcb_ref:     (1, CLS)      f32   FC bias
    out_ref:     (N, CLS)      f32   logits
    """
    oc = convw_ref.shape[0]
    n, _ = out_ref.shape
    hw = patches_ref.shape[1] // n

    # (1) Conv for the ENTIRE batch as one lane-dense MXU matmul (f32 accumulate),
    #     then bias + ReLU as one f32 VPU pass, then one bf16 cast (MXU operand).
    y = jnp.dot(convw_ref[...], patches_ref[...],
                preferred_element_type=jnp.float32)           # (OC, N*HW) f32
    y = jnp.maximum(y + convb_ref[...], 0.0)                  # bias + ReLU
    y = y.astype(jnp.bfloat16)

    # (2) Re-pack to the per-image NCHW flatten (N, OC*HW) using only static,
    #     128-lane-aligned slices and concats (no in-kernel reshape/transpose).
    #     Row b = [y[0, b-th HW block] | y[1, ...] | ... | y[OC-1, ...]]
    #     which is exactly the (oc*HW + hw) flatten the FC weight expects.
    rows = []
    for b in range(n):                                        # static unroll, tiny N
        rows.append(jnp.concatenate(
            [y[c:c + 1, b * hw:(b + 1) * hw] for c in range(oc)], axis=1))  # (1, OC*HW)
    act = jnp.concatenate(rows, axis=0)                       # (N, OC*HW) bf16

    # (3) Classifier: ONE MXU contraction over the whole flatten (FC weight is a
    #     single resident slab, loaded once) + ONE dense (N, CLS) store.
    logits = jnp.dot(act, fcw_ref[...],
                     preferred_element_type=jnp.float32)      # (N, CLS) f32
    out_ref[...] = logits + fcb_ref[...]


def fused_forward(patches, conv_w_mat, conv_b_col, fc_w_flat, fc_b_row, n_images):
    k, nhw = patches.shape
    oc, k2 = conv_w_mat.shape
    flat, ncls = fc_w_flat.shape
    assert k == k2 and nhw % n_images == 0 and flat == oc * (nhw // n_images)
    # Scaling notes (bake-in path, inactive at toy size):
    #  * larger N: grid=(pl.cdiv(N, tile_n),) with per-tile patch/out blocks and
    #    dimension_semantics=("parallel",) -> shards across v7x's 2 TensorCores.
    #  * pad CLS to 128 in out_shape (slice in the wrapper) for unmasked stores.
    #  * budget tiles vs 64 MiB VMEM on v7x; raise vmem_limit_bytes on v6e.
    return pl.pallas_call(
        _fused_forward_kernel,
        out_shape=jax.ShapeDtypeStruct((n_images, ncls), jnp.float32),
        grid=(1,),  # whole problem fits VMEM; single step => minimal overhead
        in_specs=[
            pl.BlockSpec((k, nhw), lambda i: (0, 0)),
            pl.BlockSpec((oc, k), lambda i: (0, 0)),
            pl.BlockSpec((oc, 1), lambda i: (0, 0)),
            pl.BlockSpec((flat, ncls), lambda i: (0, 0)),
            pl.BlockSpec((1, ncls), lambda i: (0, 0)),
        ],
        out_specs=pl.BlockSpec((n_images, ncls), lambda i: (0, 0)),
        compiler_params=pltpu.CompilerParams(
            dimension_semantics=("arbitrary",)),
    )(patches, conv_w_mat, conv_b_col, fc_w_flat, fc_b_row)


# ------------------------------ glue (fused under jit) -----------------------
def _im2col_3x3_same(x):
    """x: (N, C, H, W) NCHW -> patches (K, N*HW), K = C*9 ordered (c, kh, kw) to
    match the PyTorch Conv2d weight flatten; the fused minor dim is n-major
    (index = n*HW + h*W + w).  Runs under jit; XLA fuses pad/stack/reshape."""
    n, c, h, w = x.shape
    xp = jnp.pad(x, ((0, 0), (0, 0), (1, 1), (1, 1)))
    cols = [xp[:, :, kh:kh + h, kw:kw + w] for kh in range(3) for kw in range(3)]
    p = jnp.stack(cols, axis=2)                 # (N, C, 9, H, W)
    p = jnp.transpose(p, (1, 2, 0, 3, 4))       # (C, 9, N, H, W)
    return p.reshape(c * 9, n * h * w)          # (K, N*HW)


@jax.jit
def _forward_impl(x, conv_w_mat, conv_b_col, fc_w_flat, fc_b_row):
    patches = _im2col_3x3_same(x).astype(jnp.bfloat16)
    return fused_forward(patches, conv_w_mat, conv_b_col, fc_w_flat, fc_b_row,
                         x.shape[0])


def _reference_forward(x, conv_w, conv_b, fc_w, fc_b, compute_dtype):
    """Pure-JAX (XLA) reference from the f32 master weights.
    compute_dtype=float32  -> the original model's f32 math.
    compute_dtype=bfloat16 -> replicates the kernel's bf16-operand / f32-accumulate
                              pipeline (same rounding points), for a tight check."""
    n, c, h, w = x.shape
    oc = conv_w.shape[0]
    ncls = fc_w.shape[0]
    patches = _im2col_3x3_same(x).astype(compute_dtype)              # (K, N*HW)
    cw = conv_w.reshape(oc, c * 9).astype(compute_dtype)
    y = jnp.dot(cw, patches, preferred_element_type=jnp.float32)     # (OC, N*HW)
    y = jnp.maximum(y + conv_b.reshape(oc, 1), 0.0).astype(compute_dtype)
    act = y.reshape(oc, n, h * w).transpose(1, 0, 2).reshape(n, oc * h * w)
    fw = fc_w.reshape(ncls, oc * h * w).T.astype(compute_dtype)      # (flat, CLS)
    return (jnp.dot(act, fw, preferred_element_type=jnp.float32)
            + fc_b.reshape(1, ncls))


# ------------------------------- model / client ------------------------------
class TinyConvNet:
    """Deterministically-initialized concrete model wrapped by BaseClient.
    f32 master weights are kept for the reference; all kernel-layout work
    (reshape / flatten / bf16 cast) is hoisted here, out of the forward path."""

    def __init__(self, key, in_ch, out_ch, hw, n_classes):
        k1, k2, k3, k4 = jax.random.split(key, 4)
        flat = out_ch * hw * hw
        # f32 master weights ("the original model").
        self.conv_w = 0.1 * jax.random.normal(k1, (out_ch, in_ch, 3, 3), jnp.float32)
        self.conv_b = 0.1 * jax.random.normal(k2, (out_ch,), jnp.float32)
        self.fc_w = 0.1 * jax.random.normal(k3, (n_classes, flat), jnp.float32)
        self.fc_b = 0.1 * jax.random.normal(k4, (n_classes,), jnp.float32)

        # Kernel-layout copies.
        # (OC, C*9) matmul weight for the im2col conv, bf16 MXU operand.
        self.conv_w_mat = self.conv_w.reshape(out_ch, in_ch * 9).astype(jnp.bfloat16)
        # Conv bias as a 2-D column vector (avoids fragile 1-D VMEM refs).
        self.conv_b_col = self.conv_b.reshape(out_ch, 1)
        # FC weight pre-flattened to (OC*HW, CLS): consumes the per-image NCHW
        # flatten (index = oc*HW + hw) with a single in-kernel contraction.
        self.fc_w_flat = self.fc_w.T.astype(jnp.bfloat16)
        self.fc_b_row = self.fc_b.reshape(1, n_classes)

    def __call__(self, x):
        return _forward_impl(x, self.conv_w_mat, self.conv_b_col,
                             self.fc_w_flat, self.fc_b_row)


class BaseClient:
    """JAX/Pallas port of the FedAvg BaseClient: forward(x) = self.model(x)."""

    def __init__(self, model, user_id=0):
        self.model = model
        self.user_id = user_id

    def forward(self, x):
        return self.model(x)

    __call__ = forward

    # TODO(synk): train/eval/backward/upload/download/local_train are training-loop
    # plumbing (abstract methods / autograd hooks) with no forward-pass compute;
    # not represented in the kernel.


if __name__ == "__main__":
    key = jax.random.PRNGKey(0)
    k_params, k_x = jax.random.split(key)

    batch, in_ch, spatial, out_ch, n_classes = 2, 4, 16, 8, 10
    model = TinyConvNet(k_params, in_ch, out_ch, spatial, n_classes)
    client = BaseClient(model, user_id=0)

    x = jax.random.normal(k_x, (batch, in_ch, spatial, spatial), jnp.float32)  # NCHW
    logits = client(x)
    jax.block_until_ready(logits)
    assert logits.shape == (batch, n_classes)

    # Tight check: reference that replicates the kernel's bf16-operand /
    # f32-accumulate pipeline (only accumulation order differs).
    ref_bf16 = _reference_forward(x, model.conv_w, model.conv_b,
                                  model.fc_w, model.fc_b, jnp.bfloat16)
    assert jnp.allclose(logits, ref_bf16, atol=1e-2, rtol=1e-2), (logits, ref_bf16)

    # Loose, documented check against the original f32 model: the gap is the
    # bf16 rounding of weights, patches and the post-ReLU activation.
    ref_f32 = _reference_forward(x, model.conv_w, model.conv_b,
                                 model.fc_w, model.fc_b, jnp.float32)
    assert jnp.allclose(logits, ref_f32, atol=1e-1, rtol=1e-1), (logits, ref_f32)

    print("KERNEL_OK")
</pallas_src>

<mosaic_0001>
module attributes {stable_mosaic.version = 11 : i64} {
  func.func @_fused_forward_kernel(%arg0: i32, %arg1: memref<36x512xbf16, #tpu.memory_space<vmem>>, %arg2: memref<8x36xbf16, #tpu.memory_space<vmem>>, %arg3: memref<8x1xf32, #tpu.memory_space<vmem>>, %arg4: memref<2048x10xbf16, #tpu.memory_space<vmem>>, %arg5: memref<1x10xf32, #tpu.memory_space<vmem>>, %arg6: memref<2x10xf32, #tpu.memory_space<vmem>>) attributes {dimension_semantics = [#tpu.dimension_semantics<arbitrary>], iteration_bounds = array<i64: 1>, scalar_prefetch = 0 : i64, scratch_operands = 0 : i64, tpu.core_type = #tpu.core_type<tc>, window_params = [{pipeline_mode = #tpu.pipeline_mode<synchronous>, transform_indices = @transform_0, window_bounds = array<i64: 36, 512>}, {pipeline_mode = #tpu.pipeline_mode<synchronous>, transform_indices = @transform_1, window_bounds = array<i64: 8, 36>}, {pipeline_mode = #tpu.pipeline_mode<synchronous>, transform_indices = @transform_2, window_bounds = array<i64: 8, 1>}, {pipeline_mode = #tpu.pipeline_mode<synchronous>, transform_indices = @transform_3, window_bounds = array<i64: 2048, 10>}, {pipeline_mode = #tpu.pipeline_mode<synchronous>, transform_indices = @transform_4, window_bounds = array<i64: 1, 10>}, {pipeline_mode = #tpu.pipeline_mode<synchronous>, transform_indices = @transform_5, window_bounds = array<i64: 2, 10>}]} {
    %c0 = arith.constant 0 : index
    %c0_0 = arith.constant 0 : index
    %0 = vector.load %arg2[%c0, %c0_0] : memref<8x36xbf16, #tpu.memory_space<vmem>>, vector<8x36xbf16>
    %c0_1 = arith.constant 0 : index
    %c0_2 = arith.constant 0 : index
    %1 = vector.load %arg1[%c0_1, %c0_2] : memref<36x512xbf16, #tpu.memory_space<vmem>>, vector<36x512xbf16>
    %cst = arith.constant dense<0.000000e+00> : vector<8x512xf32>
    %2 = tpu.matmul %0, %1, %cst {dimension_numbers = #tpu.dot_dimension_numbers<[1], [0], [0], [1], [0, 0, 1, 1], [], []>} : vector<8x36xbf16>, vector<36x512xbf16>, vector<8x512xf32> -> vector<8x512xf32>
    %c0_3 = arith.constant 0 : index
    %c0_4 = arith.constant 0 : index
    %3 = vector.load %arg3[%c0_3, %c0_4] : memref<8x1xf32, #tpu.memory_space<vmem>>, vector<8x1xf32>
    %4 = vector.broadcast %3 : vector<8x1xf32> to vector<8x512xf32>
    %5 = arith.addf %2, %4 : vector<8x512xf32>
    %cst_5 = arith.constant 0.000000e+00 : f32
    %6 = vector.broadcast %cst_5 : f32 to vector<8x512xf32>
    %7 = arith.maximumf %5, %6 : vector<8x512xf32>
    %8 = arith.truncf %7 : vector<8x512xf32> to vector<8x512xbf16>
    %9 = vector.extract_strided_slice %8 {offsets = [0, 0], sizes = [1, 256], strides = [1, 1]} : vector<8x512xbf16> to vector<1x256xbf16>
    %10 = vector.extract_strided_slice %8 {offsets = [1, 0], sizes = [1, 256], strides = [1, 1]} : vector<8x512xbf16> to vector<1x256xbf16>
    %11 = vector.extract_strided_slice %8 {offsets = [2, 0], sizes = [1, 256], strides = [1, 1]} : vector<8x512xbf16> to vector<1x256xbf16>
    %12 = vector.extract_strided_slice %8 {offsets = [3, 0], sizes = [1, 256], strides = [1, 1]} : vector<8x512xbf16> to vector<1x256xbf16>
    %13 = vector.extract_strided_slice %8 {offsets = [4, 0], sizes = [1, 256], strides = [1, 1]} : vector<8x512xbf16> to vector<1x256xbf16>
    %14 = vector.extract_strided_slice %8 {offsets = [5, 0], sizes = [1, 256], strides = [1, 1]} : vector<8x512xbf16> to vector<1x256xbf16>
    %15 = vector.extract_strided_slice %8 {offsets = [6, 0], sizes = [1, 256], strides = [1, 1]} : vector<8x512xbf16> to vector<1x256xbf16>
    %16 = vector.extract_strided_slice %8 {offsets = [7, 0], sizes = [1, 256], strides = [1, 1]} : vector<8x512xbf16> to vector<1x256xbf16>
    %17 = tpu.concatenate %9, %10, %11, %12, %13, %14, %15, %16 in 1 : vector<1x256xbf16>, vector<1x256xbf16>, vector<1x256xbf16>, vector<1x256xbf16>, vector<1x256xbf16>, vector<1x256xbf16>, vector<1x256xbf16>, vector<1x256xbf16> -> vector<1x2048xbf16>
    %18 = vector.extract_strided_slice %8 {offsets = [0, 256], sizes = [1, 256], strides = [1, 1]} : vector<8x512xbf16> to vector<1x256xbf16>
    %19 = vector.extract_strided_slice %8 {offsets = [1, 256], sizes = [1, 256], strides = [1, 1]} : vector<8x512xbf16> to vector<1x256xbf16>
    %20 = vector.extract_strided_slice %8 {offsets = [2, 256], sizes = [1, 256], strides = [1, 1]} : vector<8x512xbf16> to vector<1x256xbf16>
    %21 = vector.extract_strided_slice %8 {offsets = [3, 256], sizes = [1, 256], strides = [1, 1]} : vector<8x512xbf16> to vector<1x256xbf16>
    %22 = vector.extract_strided_slice %8 {offsets = [4, 256], sizes = [1, 256], strides = [1, 1]} : vector<8x512xbf16> to vector<1x256xbf16>
    %23 = vector.extract_strided_slice %8 {offsets = [5, 256], sizes = [1, 256], strides = [1, 1]} : vector<8x512xbf16> to vector<1x256xbf16>
    %24 = vector.extract_strided_slice %8 {offsets = [6, 256], sizes = [1, 256], strides = [1, 1]} : vector<8x512xbf16> to vector<1x256xbf16>
    %25 = vector.extract_strided_slice %8 {offsets = [7, 256], sizes = [1, 256], strides = [1, 1]} : vector<8x512xbf16> to vector<1x256xbf16>
    %26 = tpu.concatenate %18, %19, %20, %21, %22, %23, %24, %25 in 1 : vector<1x256xbf16>, vector<1x256xbf16>, vector<1x256xbf16>, vector<1x256xbf16>, vector<1x256xbf16>, vector<1x256xbf16>, vector<1x256xbf16>, vector<1x256xbf16> -> vector<1x2048xbf16>
    %27 = tpu.concatenate %17, %26 in 0 : vector<1x2048xbf16>, vector<1x2048xbf16> -> vector<2x2048xbf16>
    %c0_6 = arith.constant 0 : index
    %c0_7 = arith.constant 0 : index
    %28 = vector.load %arg4[%c0_6, %c0_7] : memref<2048x10xbf16, #tpu.memory_space<vmem>>, vector<2048x10xbf16>
    %cst_8 = arith.constant dense<0.000000e+00> : vector<2x10xf32>
    %29 = tpu.matmul %27, %28, %cst_8 {dimension_numbers = #tpu.dot_dimension_numbers<[1], [0], [0], [1], [0, 0, 1, 1], [], []>} : vector<2x2048xbf16>, vector<2048x10xbf16>, vector<2x10xf32> -> vector<2x10xf32>
    %c0_9 = arith.constant 0 : index
    %c0_10 = arith.constant 0 : index
    %30 = vector.load %arg5[%c0_9, %c0_10] : memref<1x10xf32, #tpu.memory_space<vmem>>, vector<1x10xf32>
    %31 = vector.broadcast %30 : vector<1x10xf32> to vector<2x10xf32>
    %32 = arith.addf %29, %31 : vector<2x10xf32>
    %c0_11 = arith.constant 0 : index
    %c0_12 = arith.constant 0 : index
    %33 = vector.load %arg6[%c0_11, %c0_12] : memref<2x10xf32, #tpu.memory_space<vmem>>, vector<2x10xf32>
    tpu.vector_store %arg6[%c0_11, %c0_12], %32 {strides = array<i32>} : memref<2x10xf32, #tpu.memory_space<vmem>>, vector<2x10xf32>,
    return
  }
  func.func @transform_0(%arg0: i32) -> (i32, i32) {
    %c0_i32 = arith.constant 0 : i32
    %c0_i32_0 = arith.constant 0 : i32
    %c0_i32_1 = arith.constant 0 : i32
    return %c0_i32, %c0_i32_0 : i32, i32
  }
  func.func @transform_1(%arg0: i32) -> (i32, i32) {
    %c0_i32 = arith.constant 0 : i32
    %c0_i32_0 = arith.constant 0 : i32
    %c0_i32_1 = arith.constant 0 : i32
    return %c0_i32, %c0_i32_0 : i32, i32
  }
  func.func @transform_2(%arg0: i32) -> (i32, i32) {
    %c0_i32 = arith.constant 0 : i32
    %c0_i32_0 = arith.constant 0 : i32
    %c0_i32_1 = arith.constant 0 : i32
    return %c0_i32, %c0_i32_0 : i32, i32
  }
  func.func @transform_3(%arg0: i32) -> (i32, i32) {
    %c0_i32 = arith.constant 0 : i32
    %c0_i32_0 = arith.constant 0 : i32
    %c0_i32_1 = arith.constant 0 : i32
    return %c0_i32, %c0_i32_0 : i32, i32
  }
  func.func @transform_4(%arg0: i32) -> (i32, i32) {
    %c0_i32 = arith.constant 0 : i32
    %c0_i32_0 = arith.constant 0 : i32
    %c0_i32_1 = arith.constant 0 : i32
    return %c0_i32, %c0_i32_0 : i32, i32
  }
  func.func @transform_5(%arg0: i32) -> (i32, i32) {
    %c0_i32 = arith.constant 0 : i32
    %c0_i32_0 = arith.constant 0 : i32
    %c0_i32_1 = arith.constant 0 : i32
    return %c0_i32, %c0_i32_0 : i32, i32
  }
}

</mosaic_0001>

<bundles_post_ra>
// kernel: _forward_impl.1
= control target key start
LH: loop header
LB: loop body
LE: loop exit
PB: predicated region body
PF: predicated region fallthrough
CT: control target
= control target key end

     0   :  { %v2190_v2 = vmov 0   ;;  %vm93_vm0 = vcmask 1041408   ;;  %vm89_vm1 = vcmask 293888   ;;  %s2779_s0 = inlined_call_operand.vmem [shape: bf16[36,512], index: 0, kind: input, shape index: {}]   ;;  %s2780_s1 = inlined_call_operand.vmem [shape: bf16[8,36], index: 1, kind: input, shape index: {}]   ;;  %s2781_s2 = inlined_call_operand.vmem [shape: f32[8,1], index: 2, kind: input, shape index: {}]   ;;  %s2782_s3 = inlined_call_operand.vmem [shape: bf16[2048,10], index: 3, kind: input, shape index: {}]   ;;  %s2783_s4 = inlined_call_operand.vmem [shape: f32[1,10], index: 4, kind: input, shape index: {}]   ;;  %s2784_s5 = inlined_call_operand.hbm [shape: f32[2,10], index: 5, kind: output, shape index: {}]  }
   0x1   :  { %v2022_v0 = vld [vmem:[%s2779_s0 + $0x4] ss:$16 sps:$4 sm:$0xff]   ;;  %v2024_v1 = vld [vmem:[%s2779_s0 + $0xc] ss:$16 sps:$4 sm:$0xff]   ;;  %138 = vmatprep.mubr.bf16.mxu0 %v2190_v2  ;;  %179 = vmatprep.mubr.bf16.mxu1 %v2190_v2  ;;  %v2026_v3 = vld [vmem:[%s2779_s0] ss:$16 sps:$4 sm:$0xff]  }
   0x2   :  { %106 = vmatprep.subr.bf16.mxu0 %v2022_v0  ;;  %v2027_v4 = vld [vmem:[%s2779_s0 + $0x8] ss:$16 sps:$4 sm:$0xff]   ;;  %2021 = vset.pattern.permute.xlu0 %v2190_v2  ;;  %v2028_v5 = vld [vmem:[%s2779_s0 + $0x24] ss:$16 sps:$4 sm:$0xff]   ;;  %v2030_v6 = vld [vmem:[%s2779_s0 + $0x2c] ss:$16 sps:$4 sm:$0xff]  }
   0x3   :  { %147 = vmatprep.subr.bf16.mxu1 %v2024_v1  ;;  %107 = vmatpush1.bf16.msra.mxu0 %v2026_v3  ;;  %v2032_v7 = vld [vmem:[%s2779_s0 + $0x20] ss:$16 sps:$4 sm:$0xff]   ;;  %v2033_v8 = vld [vmem:[%s2779_s0 + $0x28] ss:$16 sps:$4 sm:$0xff]  }
   0x4   :  { %148 = vmatpush1.bf16.msra.mxu1 %v2027_v4  ;;  %108 = vmatprep.subr.bf16.mxu0 %v2028_v5  ;;  %v31_v9 = vld [vmem:[%s2779_s0 + $0x40] sm:$0x33]  ;;  %v32_v10 = vld [vmem:[%s2779_s0 + $0x48] sm:$0x33]  ;;  %v2046_v27 = vld [vmem:[%s2782_s3 + $0x50] sm:$0xff]  }
   0x5   :  { %149 = vmatprep.subr.bf16.mxu1 %v2030_v6  ;;  %v1707_v11 = vcombine.high %v31_v9, %v31_v9  ;;  %v1709_v12 = vcombine.high %v32_v10, %v32_v10  ;;  %v1706_v13 = vcombine.low %v31_v9, %v31_v9  ;;  %v1708_v14 = vcombine.low %v32_v10, %v32_v10  ;;  %v33_v15 = vld [vmem:[%s2781_s2] sm:$0xff]  ;;  %v2042_v23 = vld [vmem:[%s2782_s3 + $0x48] sm:$0xff]   ;;  %v2048_v28 = vld [vmem:[%s2782_s3 + $0xd0] sm:$0xff]  }
   0x6   :  { %36 = vperm.xlu0 %2021, %v33_v15   ;;  %v2038_v18 = vld [vmem:[%s2782_s3 + $0x40] sm:$0xff]   ;;  %v2044_v24 = vld [vmem:[%s2782_s3 + $0xc8] sm:$0xff]   ;;  %v2047_v29 = vld [vmem:[%s2782_s3 + $0x10] sm:$0xff]  }
   0x7   :  { %109 = vmatpush1.bf16.msra.mxu0 %v2032_v7  ;;  %v95_v16 = vsel %vm93_vm0, %v1706_v13, 0  ;;  %v101_v17 = vsel %vm93_vm0, %v1708_v14, 0  ;;  %v2040_v19 = vld [vmem:[%s2782_s3 + $0xc0] sm:$0xff]   ;;  %v2043_v25 = vld [vmem:[%s2782_s3 + $0x8] sm:$0xff]   ;;  %v2049_v30 = vld [vmem:[%s2782_s3 + $0x90] sm:$0xff]  }
   0x8   :  { %150 = vmatpush1.bf16.msra.mxu1 %v2033_v8  ;;  %1710 = vmatprep.subr.msk.bf16.mxu0 %vm93_vm0, %v1707_v11  ;;  %v22_v20 = vld [vmem:[%s2780_s1] sm:$0xf]  ;;  %v2045_v26 = vld [vmem:[%s2782_s3 + $0x88] sm:$0xff]   ;;  %v2050_v31 = vld [vmem:[%s2782_s3 + $0x58] sm:$0xff]  }
   0x9   :  { %1712 = vmatprep.subr.msk.bf16.mxu1 %vm93_vm0, %v1709_v12  ;;  %v2039_v21 = vld [vmem:[%s2782_s3] sm:$0xff]   ;;  %v2052_v32 = vld [vmem:[%s2782_s3 + $0xd8] sm:$0xff]   ;;  %v2058_v39 = vld [vmem:[%s2782_s3 + $0x68] sm:$0xff]  }
   0xa   :  { %v2041_v22 = vld [vmem:[%s2782_s3 + $0x80] sm:$0xff]   ;;  %v2051_v33 = vld [vmem:[%s2782_s3 + $0x18] sm:$0xff]   ;;  %v2059_v40 = vld [vmem:[%s2782_s3 + $0x28] sm:$0xff]  }
   0xb   :  { %111 = vmatpush1.bf16.msra.mxu0 %v95_v16  ;;  %v2053_v34 = vld [vmem:[%s2782_s3 + $0x98] sm:$0xff]   ;;  %v2054_v35 = vld [vmem:[%s2782_s3 + $0x60] sm:$0xff]   ;;  %v2060_v41 = vld [vmem:[%s2782_s3 + $0xe8] sm:$0xff]  }
   0xc   :  { %152 = vmatpush1.bf16.msra.mxu1 %v101_v17  ;;  %1843 = vmatprep.subr.bf16.mxu0 %v2038_v18  ;;  %v2056_v36 = vld [vmem:[%s2782_s3 + $0xe0] sm:$0xff]   ;;  %v2061_v42 = vld [vmem:[%s2782_s3 + $0xa8] sm:$0xff]   ;;  %v2062_v43 = vld [vmem:[%s2782_s3 + $0x70] sm:$0xff]  }
   0xd   :  { %1865 = vmatprep.subr.bf16.mxu1 %v2040_v19  ;;  %v2055_v37 = vld [vmem:[%s2782_s3 + $0x20] sm:$0xff]   ;;  %v2063_v44 = vld [vmem:[%s2782_s3 + $0x30] sm:$0xff]  }
   0xe   :  { %1711 = vmatmul.mubr.msk.bf16.vlgmr.msra.gmra.mrb[0].mxu0 %vm89_vm1, %v22_v20  ;;  %v2057_v38 = vld [vmem:[%s2782_s3 + $0xa0] sm:$0xff]  }
   0xf   :  { %1713 = vmatmul.mubr.msk.bf16.vlgmr.msra.gmra.mrb[0].mxu1 %vm89_vm1, %v22_v20  ;;  %1844 = vmatpush3.bf16.msra.mxu0 %v2039_v21 }
  0x10   :  { %1866 = vmatpush3.bf16.msra.mxu1 %v2041_v22  ;;  %1845 = vmatprep.subr.bf16.mxu0 %v2042_v23 }
  0x11   :  { %1867 = vmatprep.subr.bf16.mxu1 %v2044_v24 }
  0x13   :  { %1846 = vmatpush3.bf16.msra.mxu0 %v2043_v25 }
  0x14   :  { %1868 = vmatpush3.bf16.msra.mxu1 %v2045_v26  ;;  %1847 = vmatprep.subr.bf16.mxu0 %v2046_v27 }
  0x15   :  { %1869 = vmatprep.subr.bf16.mxu1 %v2048_v28 }
  0x17   :  { %1848 = vmatpush3.bf16.msra.mxu0 %v2047_v29 }
  0x18   :  { %1870 = vmatpush3.bf16.msra.mxu1 %v2049_v30  ;;  %1849 = vmatprep.subr.bf16.mxu0 %v2050_v31 }
  0x19   :  { %1871 = vmatprep.subr.bf16.mxu1 %v2052_v32 }
  0x1b   :  { %1850 = vmatpush3.bf16.msra.mxu0 %v2051_v33 }
  0x1c   :  { %1872 = vmatpush3.bf16.msra.mxu1 %v2053_v34  ;;  %1851 = vmatprep.subr.bf16.mxu0 %v2054_v35 }
  0x1d   :  { %1873 = vmatprep.subr.bf16.mxu1 %v2056_v36 }
  0x1f   :  { %1852 = vmatpush3.bf16.msra.mxu0 %v2055_v37 }
  0x20   :  { %1874 = vmatpush3.bf16.msra.mxu1 %v2057_v38  ;;  %1853 = vmatprep.subr.bf16.mxu0 %v2058_v39 }
  0x21   :  { %1875 = vmatprep.subr.bf16.mxu1 %v2060_v41 }
  0x23   :  { %1854 = vmatpush3.bf16.msra.mxu0 %v2059_v40 }
  0x24   :  { %1876 = vmatpush3.bf16.msra.mxu1 %v2061_v42 }
  0x25   :  { %10 = vsyncpa [#allocation3], 0  ;;  %1855 = vmatprep.subr.bf16.mxu0 %v2062_v43  ;;  %v2064_v45 = vld [vmem:[%s2782_s3 + $0xf0] sm:$0xff]   ;;  %v2066_v47 = vld [vmem:[%s2782_s3 + $0x78] sm:$0xff]   ;;  %vm312_vm2 = vcmask 1040384   ;;  %vm1682_vm5 = vcmask 74752  }
  0x26   :  { %v2065_v46 = vld [vmem:[%s2782_s3 + $0xb0] sm:$0xff]   ;;  %1877 = vmatprep.subr.bf16.mxu1 %v2064_v45  ;;  %v2067_v48 = vld [vmem:[%s2782_s3 + $0x38] sm:$0xff]   ;;  %v2070_v51 = vld [vmem:[%s2782_s3 + $0x140] sm:$0xff]   ;;  %vm313_vm3 = vsmask.f32 256 }
  0x27   :  { %1856 = vmatpush3.bf16.msra.mxu0 %v2063_v44  ;;  %v2068_v49 = vld [vmem:[%s2782_s3 + $0xf8] sm:$0xff]   ;;  %v2072_v52 = vld [vmem:[%s2782_s3 + $0x1c0] sm:$0xff]   ;;  %vm2372_vm4 = vmand %vm312_vm2, %vm313_vm3 }
  0x28   :  { %1878 = vmatpush3.bf16.msra.mxu1 %v2065_v46  ;;  %1857 = vmatprep.subr.bf16.mxu0 %v2066_v47  ;;  %v2069_v50 = vld [vmem:[%s2782_s3 + $0xb8] sm:$0xff]   ;;  %v2071_v19 = vld [vmem:[%s2782_s3 + $0x100] sm:$0xff]   ;;  %v2074_v30 = vld [vmem:[%s2782_s3 + $0x148] sm:$0xff]  }
  0x29   :  { %1879 = vmatprep.subr.bf16.mxu1 %v2068_v49  ;;  %v2073_v29 = vld [vmem:[%s2782_s3 + $0x180] sm:$0xff]   ;;  %v2076_v35 = vld [vmem:[%s2782_s3 + $0x1c8] sm:$0xff]   ;;  %v2078_v44 = vld [vmem:[%s2782_s3 + $0x150] sm:$0xff]  }
  0x2a   :  { %v2075_v39 = vld [vmem:[%s2782_s3 + $0x108] sm:$0xff]  }
  0x2b   :  { %1858 = vmatpush3.bf16.msra.mxu0 %v2067_v48  ;;  %v2077_v48 = vld [vmem:[%s2782_s3 + $0x188] sm:$0xff]  }
  0x2c   :  { %1880 = vmatpush3.bf16.msra.mxu1 %v2069_v50  ;;  %1887 = vmatprep.subr.bf16.mxu0 %v2070_v51  ;;  %v2092_v10 = vld [vmem:[%s2782_s3 + $0x1e8] sm:$0xff]  }
  0x2d   :  { %1909 = vmatprep.subr.bf16.mxu1 %v2072_v52 }
  0x85   :  { %v37_v53 = vpop.permute.xlu0 %36 }
  0xe1   :  { %v140_v54 = vpop.f32.mrb[0].mxu0 }
  0xe2   :  { %v181_v55 = vpop.f32.mrb[0].mxu1  ;;  %v141_v56 = vadd.f32 %v140_v54, %v37_v53  ;;  %v142_v58 = vpop.f32.mrb[1].mxu0 }
  0xe3   :  { %v182_v57 = vadd.f32 %v181_v55, %v37_v53  ;;  %v183_v59 = vpop.f32.mrb[1].mxu1  ;;  %v143_v60 = vadd.f32 %v142_v58, %v37_v53  ;;  %v144_v62 = vpop.f32.mrb[2].mxu0  ;;  %v2079_v58 = vld [vmem:[%s2782_s3 + $0x110] sm:$0xff]  }
  0xe4   :  { %v184_v61 = vadd.f32 %v183_v59, %v37_v53  ;;  %v185_v63 = vpop.f32.mrb[2].mxu1  ;;  %v188_v0 = vmax.f32 %v141_v56, 0.0  ;;  %v145_v2 = vpop.f32.mrb[3].mxu0  ;;  %v2080_v53 = vld [vmem:[%s2782_s3 + $0x1d0] sm:$0xff]  }
  0xe5   :  { %v190_v1 = vmax.f32 %v182_v57, 0.0  ;;  %v186_v3 = vpop.f32.mrb[3].mxu1  ;;  %v189_v4 = vmax.f32 %v143_v60, 0.0  ;;  %v2082_v63 = vld [vmem:[%s2782_s3 + $0x158] sm:$0xff]  }
  0xe6   :  { %v191_v5 = vmax.f32 %v184_v61, 0.0  ;;  %v2364_v6 = vpack.c.bf16 %v188_v0, %v188_v0 }
  0xe7   :  { %v2366_v7 = vpack.c.bf16 %v190_v1, %v190_v1  ;;  %v2368_v8 = vpack.c.bf16 %v189_v4, %v189_v4  ;;  %v2081_v4 = vld [vmem:[%s2782_s3 + $0x190] sm:$0xff]  }
  0xe8   :  { %v2370_v9 = vpack.c.bf16 %v191_v5, %v191_v5  ;;  %v2381_v13 = vshrl.u32 %v2364_v6, 16  ;;  %v206_v17 = vrot.slane %v2364_v6, 1  ;;  %v214_v50 = vrot.slane %v2364_v6, 2 }
  0xe9   :  { %v2377_v11 = vshrl.u32 %v2366_v7, 16  ;;  %v250_v12 = vshll.u32 %v2366_v7, 16  ;;  %v2388_v16 = vshrl.u32 %v2368_v8, 16  ;;  %v238_v22 = vrot.slane %v2366_v7, 1 }
  0xea   :  { %v2384_v14 = vshrl.u32 %v2370_v9, 16  ;;  %v252_v15 = vshll.u32 %v2370_v9, 16  ;;  %v239_v20 = vrot.slane %v2370_v9, 1  ;;  %v207_v25 = vrot.slane %v2368_v8, 1 }
  0xeb   :  { %v315_v18 = vsel %vm2372_vm4, %v2364_v6, %v250_v12  ;;  %v255_v21 = vshll.u32 %v2377_v11, 16  ;;  %v211_v31 = vrot.slane %v2388_v16, 1  ;;  %v261_v32 = vshll.u32 %v238_v22, 16  ;;  %v2088_v22 = vld [vmem:[%s2782_s3 + $0x1e0] sm:$0xff]  }
  0xec   :  { %v316_v23 = vsel %vm2372_vm4, %v2368_v8, %v252_v15  ;;  %v258_v24 = vshll.u32 %v2384_v14, 16  ;;  %v241_v26 = vrot.slane %v2384_v14, 1  ;;  %v264_v27 = vshll.u32 %v239_v20, 16 }
  0xed   :  { %1394 = vmatprep.mubr.bf16.mxu0 %v316_v23  ;;  %v317_v28 = vsel %vm2372_vm4, %v2381_v13, %v255_v21  ;;  %v215_v36 = vrot.slane %v2368_v8, 2  ;;  %v243_v37 = vrot.slane %v2370_v9, 2  ;;  %v2431_v40 = vsel %vm2372_vm4, %v206_v17, %v261_v32  ;;  %v2098_v32 = vld [vmem:[%s2782_s3 + $0x178] sm:$0xff]  }
  0xee   :  { %1395 = vmatmul.mubr.bf16.vlgmr.msra.gmra.mrb[4].mxu0 %v315_v18  ;;  %v318_v33 = vsel %vm2372_vm4, %v2388_v16, %v258_v24  ;;  %v270_v34 = vshll.u32 %v241_v26, 16  ;;  %v320_v38 = vsel %vm2372_vm4, %v207_v25, %v264_v27  ;;  %v210_v41 = vrot.slane %v2381_v13, 1  ;;  %v2087_v24 = vld [vmem:[%s2782_s3 + $0x120] sm:$0xff]   ;;  %v2090_v25 = vld [vmem:[%s2782_s3 + $0x168] sm:$0xff]  }
  0xef   :  { %1888 = vmatpush3.bf16.msra.mxu0 %v2071_v19  ;;  %1434 = vmatprep.mubr.bf16.mxu1 %v318_v33  ;;  %v240_v42 = vrot.slane %v2377_v11, 1  ;;  %v276_v45 = vshll.u32 %v243_v37, 16  ;;  %v219_v46 = vrot.slane %v2388_v16, 2  ;;  %v245_v47 = vrot.slane %v2384_v14, 2  ;;  %v2086_v19 = vld [vmem:[%s2782_s3 + $0x160] sm:$0xff]   ;;  %v2091_v27 = vld [vmem:[%s2782_s3 + $0x128] sm:$0xff]  }
  0xf0   :  { %1474 = vmatprep.mubr.bf16.mxu0 %v320_v38  ;;  %1435 = vmatmul.mubr.bf16.vlgmr.msra.gmra.mrb[4].mxu1 %v317_v28  ;;  %v322_v43 = vsel %vm2372_vm4, %v211_v31, %v270_v34  ;;  %v242_v51 = vrot.slane %v2366_v7, 2  ;;  %v247_v52 = vrot.slane %v2370_v9, 3  ;;  %v218_v56 = vrot.slane %v2381_v13, 2  ;;  %v2089_v26 = vld [vmem:[%s2782_s3 + $0x1a0] sm:$0xff]   ;;  %v2094_v28 = vld [vmem:[%s2782_s3 + $0x170] sm:$0xff]   ;;  %v2100_v34 = vld [vmem:[%s2782_s3 + $0x1f8] sm:$0xff]  }
  0xf1   :  { %1910 = vmatpush3.bf16.msra.mxu1 %v2073_v29  ;;  %1889 = vmatprep.subr.bf16.mxu0 %v2074_v30  ;;  %v267_v49 = vshll.u32 %v240_v42, 16  ;;  %v2453_v54 = vsel %vm2372_vm4, %v215_v36, %v276_v45  ;;  %v282_v55 = vshll.u32 %v245_v47, 16  ;;  %v244_v57 = vrot.slane %v2377_v11, 2  ;;  %v2093_v29 = vld [vmem:[%s2782_s3 + $0x1a8] sm:$0xff]   ;;  %v2096_v30 = vld [vmem:[%s2782_s3 + $0x1f0] sm:$0xff]   ;;  %v2102_v36 = vld [vmem:[%s2782_s3 + $0x240] sm:$0xff]  }
  0xf2   :  { %1514 = vmatprep.mubr.bf16.mxu1 %v322_v43  ;;  %1911 = vmatprep.subr.bf16.mxu1 %v2076_v35  ;;  %v273_v60 = vshll.u32 %v242_v51, 16  ;;  %v223_v61 = vrot.slane %v2368_v8, 3  ;;  %v288_v62 = vshll.u32 %v247_v52, 16  ;;  %v227_v2 = vrot.slane %v2388_v16, 3  ;;  %v2095_v31 = vld [vmem:[%s2782_s3 + $0x130] sm:$0xff]   ;;  %v2099_v35 = vld [vmem:[%s2782_s3 + $0x138] sm:$0xff]  }
  0xf3   :  { %1890 = vmatpush3.bf16.msra.mxu0 %v2075_v39  ;;  %v2462_v59 = vsel %vm2372_vm4, %v210_v41, %v267_v49  ;;  %v2470_v0 = vsel %vm2372_vm4, %v219_v46, %v282_v55  ;;  %v279_v1 = vshll.u32 %v244_v57, 16  ;;  %v249_v3 = vrot.slane %v2384_v14, 3  ;;  %v2084_v14 = vld [vmem:[%s2782_s3 + $0x1d8] sm:$0xff]   ;;  %v2097_v33 = vld [vmem:[%s2782_s3 + $0x1b0] sm:$0xff]   ;;  %v2104_v38 = vld [vmem:[%s2782_s3 + $0x2c0] sm:$0xff]  }
  0xf4   :  { %1891 = vmatprep.subr.bf16.mxu0 %v2078_v44  ;;  %v2479_v5 = vsel %vm2372_vm4, %v214_v50, %v273_v60  ;;  %v2483_v8 = vsel %vm2372_vm4, %v223_v61, %v288_v62  ;;  %v222_v9 = vrot.slane %v2364_v6, 3  ;;  %v246_v12 = vrot.slane %v2366_v7, 3  ;;  %v2083_v6 = vld [vmem:[%s2782_s3 + $0x118] sm:$0xff]   ;;  %v2103_v39 = vld [vmem:[%s2782_s3 + $0x200] sm:$0xff]   ;;  %v2106_v41 = vld [vmem:[%s2782_s3 + $0x248] sm:$0xff]  }
  0xf5   :  { %1912 = vmatpush3.bf16.msra.mxu1 %v2077_v48  ;;  %v2492_v15 = vsel %vm2372_vm4, %v218_v56, %v279_v1  ;;  %v294_v16 = vshll.u32 %v249_v3, 16  ;;  %v226_v17 = vrot.slane %v2381_v13, 3  ;;  %v248_v18 = vrot.slane %v2377_v11, 3  ;;  %v2085_v11 = vld [vmem:[%s2782_s3 + $0x198] sm:$0xff]   ;;  %v2105_v42 = vld [vmem:[%s2782_s3 + $0x280] sm:$0xff]   ;;  %v2108_v43 = vld [vmem:[%s2782_s3 + $0x2c8] sm:$0xff]  }
  0xf6   :  { %1913 = vmatprep.subr.bf16.mxu1 %v2080_v53  ;;  %v285_v7 = vshll.u32 %v246_v12, 16  ;;  %v2101_v37 = vld [vmem:[%s2782_s3 + $0x1b8] sm:$0xff]   ;;  %v2107_v44 = vld [vmem:[%s2782_s3 + $0x208] sm:$0xff]   ;;  %v2110_v45 = vld [vmem:[%s2782_s3 + $0x250] sm:$0xff]  }
  0xf7   :  { %1892 = vmatpush3.bf16.msra.mxu0 %v2079_v58  ;;  %v2504_v20 = vsel %vm2372_vm4, %v227_v2, %v294_v16  ;;  %v291_v21 = vshll.u32 %v248_v18, 16  ;;  %v2112_v46 = vld [vmem:[%s2782_s3 + $0x2d0] sm:$0xff]   ;;  %v2114_v48 = vld [vmem:[%s2782_s3 + $0x258] sm:$0xff]   ;;  %v2118_v52 = vld [vmem:[%s2782_s3 + $0x260] sm:$0xff]  }
  0xf8   :  { %1893 = vmatprep.subr.bf16.mxu0 %v2082_v63  ;;  %v2511_v13 = vsel %vm2372_vm4, %v222_v9, %v285_v7  ;;  %v2111_v47 = vld [vmem:[%s2782_s3 + $0x210] sm:$0xff]   ;;  %v2116_v50 = vld [vmem:[%s2782_s3 + $0x2d8] sm:$0xff]   ;;  %v2119_v55 = vld [vmem:[%s2782_s3 + $0x220] sm:$0xff]  }
  0xf9   :  { %1914 = vmatpush3.bf16.msra.mxu1 %v2081_v4  ;;  %v2518_v23 = vsel %vm2372_vm4, %v226_v17, %v291_v21  ;;  %v2113_v49 = vld [vmem:[%s2782_s3 + $0x290] sm:$0xff]   ;;  %v2115_v51 = vld [vmem:[%s2782_s3 + $0x218] sm:$0xff]   ;;  %v2122_v56 = vld [vmem:[%s2782_s3 + $0x268] sm:$0xff]  }
  0xfa   :  { %1915 = vmatprep.subr.bf16.mxu1 %v2084_v14  ;;  %v2117_v53 = vld [vmem:[%s2782_s3 + $0x298] sm:$0xff]   ;;  %v2121_v57 = vld [vmem:[%s2782_s3 + $0x2a0] sm:$0xff]   ;;  %v2124_v58 = vld [vmem:[%s2782_s3 + $0x2e8] sm:$0xff]  }
  0xfb   :  { %1894 = vmatpush3.bf16.msra.mxu0 %v2083_v6  ;;  %v2126_v60 = vld [vmem:[%s2782_s3 + $0x270] sm:$0xff]   ;;  %v2125_v61 = vld [vmem:[%s2782_s3 + $0x2a8] sm:$0xff]   ;;  %v2132_v2 = vld [vmem:[%s2782_s3 + $0x2f8] sm:$0xff]  }
  0xfc   :  { %1895 = vmatprep.subr.bf16.mxu0 %v2086_v19  ;;  %v2128_v62 = vld [vmem:[%s2782_s3 + $0x2f0] sm:$0xff]   ;;  %v2131_v3 = vld [vmem:[%s2782_s3 + $0x238] sm:$0xff]   ;;  %v2134_v4 = vld [vmem:[%s2782_s3 + $0x340] sm:$0xff]  }
  0xfd   :  { %1916 = vmatpush3.bf16.msra.mxu1 %v2085_v11  ;;  %v2127_v63 = vld [vmem:[%s2782_s3 + $0x230] sm:$0xff]   ;;  %v2133_v9 = vld [vmem:[%s2782_s3 + $0x2b8] sm:$0xff]   ;;  %v2136_v12 = vld [vmem:[%s2782_s3 + $0x3c0] sm:$0xff]  }
  0xfe   :  { %1917 = vmatprep.subr.bf16.mxu1 %v2088_v22  ;;  %v2129_v1 = vld [vmem:[%s2782_s3 + $0x2b0] sm:$0xff]   ;;  %v2135_v14 = vld [vmem:[%s2782_s3 + $0x300] sm:$0xff]   ;;  %v2138_v16 = vld [vmem:[%s2782_s3 + $0x348] sm:$0xff]  }
  0xff   :  { %1896 = vmatpush3.bf16.msra.mxu0 %v2087_v24  ;;  %v2137_v17 = vld [vmem:[%s2782_s3 + $0x380] sm:$0xff]   ;;  %v2140_v18 = vld [vmem:[%s2782_s3 + $0x3c8] sm:$0xff]   ;;  %v2142_v7 = vld [vmem:[%s2782_s3 + $0x350] sm:$0xff]  }
 0x100   :  { %1897 = vmatprep.subr.bf16.mxu0 %v2090_v25  ;;  %v2139_v6 = vld [vmem:[%s2782_s3 + $0x308] sm:$0xff]   ;;  %v2146_v19 = vld [vmem:[%s2782_s3 + $0x358] sm:$0xff]   ;;  %v2150_v22 = vld [vmem:[%s2782_s3 + $0x360] sm:$0xff]  }
 0x101   :  { %1918 = vmatpush3.bf16.msra.mxu1 %v2089_v26  ;;  %v2148_v21 = vld [vmem:[%s2782_s3 + $0x3d8] sm:$0xff]   ;;  %v2152_v25 = vld [vmem:[%s2782_s3 + $0x3e0] sm:$0xff]  }
 0x102   :  { %1919 = vmatprep.subr.bf16.mxu1 %v2092_v10  ;;  %v2147_v11 = vld [vmem:[%s2782_s3 + $0x318] sm:$0xff]   ;;  %v2151_v26 = vld [vmem:[%s2782_s3 + $0x320] sm:$0xff]   ;;  %v2154_v10 = vld [vmem:[%s2782_s3 + $0x368] sm:$0xff]  }
 0x103   :  { %1898 = vmatpush3.bf16.msra.mxu0 %v2091_v27  ;;  %v2149_v24 = vld [vmem:[%s2782_s3 + $0x398] sm:$0xff]   ;;  %v2153_v27 = vld [vmem:[%s2782_s3 + $0x3a0] sm:$0xff]  }
 0x104   :  { %1899 = vmatprep.subr.bf16.mxu0 %v2094_v28  ;;  %v2156_v28 = vld [vmem:[%s2782_s3 + $0x3e8] sm:$0xff]  }
 0x105   :  { %1920 = vmatpush3.bf16.msra.mxu1 %v2093_v29  ;;  %v2155_v29 = vld [vmem:[%s2782_s3 + $0x328] sm:$0xff]  }
 0x106   :  { %1921 = vmatprep.subr.bf16.mxu1 %v2096_v30  ;;  %v2158_v30 = vld [vmem:[%s2782_s3 + $0x370] sm:$0xff]  }
 0x107   :  { %1900 = vmatpush3.bf16.msra.mxu0 %v2095_v31  ;;  %v2157_v31 = vld [vmem:[%s2782_s3 + $0x3a8] sm:$0xff]  }
 0x108   :  { %1901 = vmatprep.subr.bf16.mxu0 %v2098_v32  ;;  %v2160_v32 = vld [vmem:[%s2782_s3 + $0x3f0] sm:$0xff]  }
 0x109   :  { %1922 = vmatpush3.bf16.msra.mxu1 %v2097_v33  ;;  %v2159_v33 = vld [vmem:[%s2782_s3 + $0x330] sm:$0xff]  }
 0x10a   :  { %1923 = vmatprep.subr.bf16.mxu1 %v2100_v34  ;;  %v2162_v34 = vld [vmem:[%s2782_s3 + $0x378] sm:$0xff]  }
 0x10b   :  { %1902 = vmatpush3.bf16.msra.mxu0 %v2099_v35  ;;  %v2161_v35 = vld [vmem:[%s2782_s3 + $0x3b0] sm:$0xff]  }
 0x10c   :  { %1931 = vmatprep.subr.bf16.mxu0 %v2102_v36  ;;  %v2164_v36 = vld [vmem:[%s2782_s3 + $0x3f8] sm:$0xff]  }
 0x10d   :  { %1924 = vmatpush3.bf16.msra.mxu1 %v2101_v37  ;;  %v2163_v37 = vld [vmem:[%s2782_s3 + $0x338] sm:$0xff]  }
 0x10e   :  { %1475 = vmatmul.mubr.bf16.vlgmr.msra.gmra.mrb[8].mxu0 %v2431_v40  ;;  %1953 = vmatprep.subr.bf16.mxu1 %v2104_v38  ;;  %v2109_v40 = vld [vmem:[%s2782_s3 + $0x288] sm:$0xff]   ;;  %v2165_v38 = vld [vmem:[%s2782_s3 + $0x3b8] sm:$0xff]  }
 0x10f   :  { %1932 = vmatpush3.bf16.msra.mxu0 %v2103_v39  ;;  %1554 = vmatprep.mubr.bf16.mxu0 %v2453_v54  ;;  %v2120_v54 = vld [vmem:[%s2782_s3 + $0x2e0] sm:$0xff]  }
 0x110   :  { %1515 = vmatmul.mubr.bf16.vlgmr.msra.gmra.mrb[8].mxu1 %v2462_v59  ;;  %1933 = vmatprep.subr.bf16.mxu0 %v2106_v41  ;;  %v2123_v59 = vld [vmem:[%s2782_s3 + $0x228] sm:$0xff]   ;;  %v1714_v41 = vld [vmem:[%s2783_s4] ss:$0 sm:$0xff] }
 0x111   :  { %1954 = vmatpush3.bf16.msra.mxu1 %v2105_v42  ;;  %1594 = vmatprep.mubr.bf16.mxu1 %v2470_v0  ;;  %v2130_v0 = vld [vmem:[%s2782_s3 + $0x278] sm:$0xff]  }
 0x112   :  { %1955 = vmatprep.subr.bf16.mxu1 %v2108_v43 }
 0x113   :  { %1934 = vmatpush3.bf16.msra.mxu0 %v2107_v44 }
 0x114   :  { %1935 = vmatprep.subr.bf16.mxu0 %v2110_v45 }
 0x115   :  { %1956 = vmatpush3.bf16.msra.mxu1 %v2109_v40 }
 0x116   :  { %1957 = vmatprep.subr.bf16.mxu1 %v2112_v46 }
 0x117   :  { %1936 = vmatpush3.bf16.msra.mxu0 %v2111_v47 }
 0x118   :  { %1937 = vmatprep.subr.bf16.mxu0 %v2114_v48 }
 0x119   :  { %1958 = vmatpush3.bf16.msra.mxu1 %v2113_v49 }
 0x11a   :  { %1959 = vmatprep.subr.bf16.mxu1 %v2116_v50 }
 0x11b   :  { %1938 = vmatpush3.bf16.msra.mxu0 %v2115_v51 }
 0x11c   :  { %1939 = vmatprep.subr.bf16.mxu0 %v2118_v52 }
 0x11d   :  { %1960 = vmatpush3.bf16.msra.mxu1 %v2117_v53 }
 0x11e   :  { %1961 = vmatprep.subr.bf16.mxu1 %v2120_v54 }
 0x11f   :  { %1940 = vmatpush3.bf16.msra.mxu0 %v2119_v55 }
 0x120   :  { %1941 = vmatprep.subr.bf16.mxu0 %v2122_v56 }
 0x121   :  { %1962 = vmatpush3.bf16.msra.mxu1 %v2121_v57 }
 0x122   :  { %1963 = vmatprep.subr.bf16.mxu1 %v2124_v58 }
 0x123   :  { %1942 = vmatpush3.bf16.msra.mxu0 %v2123_v59 }
 0x124   :  { %1943 = vmatprep.subr.bf16.mxu0 %v2126_v60 }
 0x125   :  { %1964 = vmatpush3.bf16.msra.mxu1 %v2125_v61 }
 0x126   :  { %1965 = vmatprep.subr.bf16.mxu1 %v2128_v62 }
 0x127   :  { %1944 = vmatpush3.bf16.msra.mxu0 %v2127_v63 }
 0x128   :  { %1945 = vmatprep.subr.bf16.mxu0 %v2130_v0 }
 0x129   :  { %1966 = vmatpush3.bf16.msra.mxu1 %v2129_v1 }
 0x12a   :  { %1967 = vmatprep.subr.bf16.mxu1 %v2132_v2 }
 0x12b   :  { %1946 = vmatpush3.bf16.msra.mxu0 %v2131_v3 }
 0x12c   :  { %1975 = vmatprep.subr.bf16.mxu0 %v2134_v4 }
 0x12d   :  { %1968 = vmatpush3.bf16.msra.mxu1 %v2133_v9 }
 0x12e   :  { %1555 = vmatmul.mubr.bf16.vlgmr.msra.gmra.mrb[12].mxu0 %v2479_v5  ;;  %1997 = vmatprep.subr.bf16.mxu1 %v2136_v12  ;;  %v2141_v5 = vld [vmem:[%s2782_s3 + $0x388] sm:$0xff]  }
 0x12f   :  { %1976 = vmatpush3.bf16.msra.mxu0 %v2135_v14  ;;  %1634 = vmatprep.mubr.bf16.mxu0 %v2483_v8  ;;  %v2144_v8 = vld [vmem:[%s2782_s3 + $0x3d0] sm:$0xff]  }
 0x130   :  { %1595 = vmatmul.mubr.bf16.vlgmr.msra.gmra.mrb[12].mxu1 %v2492_v15  ;;  %1977 = vmatprep.subr.bf16.mxu0 %v2138_v16  ;;  %v2143_v15 = vld [vmem:[%s2782_s3 + $0x310] sm:$0xff]  }
 0x131   :  { %1998 = vmatpush3.bf16.msra.mxu1 %v2137_v17  ;;  %1674 = vmatprep.mubr.bf16.mxu1 %v2504_v20  ;;  %v2145_v20 = vld [vmem:[%s2782_s3 + $0x390] sm:$0xff]   ;;  %s2191_s3 = smov [#allocation2]  }
 0x132   :  { %1999 = vmatprep.subr.bf16.mxu1 %v2140_v18  ;;  %s1690_s4 = sshll.u32 %s2191_s3, 4  ;;  %s1691_s4 = int_to_ptr.vmem [resolvable:$true] %s1690_s4 }
 0x133   :  { %1978 = vmatpush3.bf16.msra.mxu0 %v2139_v6  ;;  %s2166_s21 = scalar_lea.vmem %s1691_s4, 32  ;;  %p2171_p1 = scmp.lt.s32.totalorder %s1691_s4, %s1691_s4 }
 0x134   :  { %1979 = vmatprep.subr.bf16.mxu0 %v2142_v7  ;;  %p2167_p0 = scmp.ne.s32.totalorder %s1691_s4, %s2166_s21  ;;  %p2172_p2 = scmp.lt.s32.totalorder %s2166_s21, %s2166_s21 }
 0x135   :  { %2000 = vmatpush3.bf16.msra.mxu1 %v2141_v5 }
 0x136   :  { %2001 = vmatprep.subr.bf16.mxu1 %v2144_v8  ;;  %p2173_p3 = por %p2172_p2, %p2171_p1 }
 0x137   :  { %1980 = vmatpush3.bf16.msra.mxu0 %v2143_v15 }
 0x138   :  { %1981 = vmatprep.subr.bf16.mxu0 %v2146_v19  ;;  %p2174_p4 = pnand %p2173_p3, %p2167_p0 }
 0x139   :  { %2002 = vmatpush3.bf16.msra.mxu1 %v2145_v20 }
 0x13a   :  { %2003 = vmatprep.subr.bf16.mxu1 %v2148_v21 }
 0x13b   :  { %1982 = vmatpush3.bf16.msra.mxu0 %v2147_v11 }
 0x13c   :  { %1983 = vmatprep.subr.bf16.mxu0 %v2150_v22 }
 0x13d   :  { %2004 = vmatpush3.bf16.msra.mxu1 %v2149_v24 }
 0x13e   :  { %2005 = vmatprep.subr.bf16.mxu1 %v2152_v25 }
 0x13f   :  { %1984 = vmatpush3.bf16.msra.mxu0 %v2151_v26 }
 0x140   :  { %1985 = vmatprep.subr.bf16.mxu0 %v2154_v10 }
 0x141   :  { %2006 = vmatpush3.bf16.msra.mxu1 %v2153_v27 }
 0x142   :  { %2007 = vmatprep.subr.bf16.mxu1 %v2156_v28 }
 0x143   :  { %1986 = vmatpush3.bf16.msra.mxu0 %v2155_v29 }
 0x144   :  { %1987 = vmatprep.subr.bf16.mxu0 %v2158_v30 }
 0x145   :  { %2008 = vmatpush3.bf16.msra.mxu1 %v2157_v31 }
 0x146   :  { %2009 = vmatprep.subr.bf16.mxu1 %v2160_v32 }
 0x147   :  { %1988 = vmatpush3.bf16.msra.mxu0 %v2159_v33 }
 0x148   :  { %1989 = vmatprep.subr.bf16.mxu0 %v2162_v34 }
 0x149   :  { %2010 = vmatpush3.bf16.msra.mxu1 %v2161_v35 }
 0x14a   :  { %2011 = vmatprep.subr.bf16.mxu1 %v2164_v36 }
 0x14b   :  { %1990 = vmatpush3.bf16.msra.mxu0 %v2163_v37 }
 0x14d   :  { %2012 = vmatpush3.bf16.msra.mxu1 %v2165_v38 }
 0x14e   :  { %1635 = vmatmul.mubr.bf16.vlgmr.msra.gmra.mrb[16].mxu0 %v2511_v13 }
 0x150   :  { %1675 = vmatmul.mubr.bf16.vlgmr.msra.gmra.mrb[16].mxu1 %v2518_v23 }
 0x1c1   :  { %v1859_v39 = vpop.f32.mrb[4].mxu0 }
 0x1c2   :  { %v1860_v42 = vpop.f32.mrb[5].mxu0 }
 0x1c3   :  { %v1861_v43 = vadd.f32 %v1860_v42, %v1859_v39  ;;  %v1862_v44 = vpop.f32.mrb[6].mxu0  ;;  %v1881_v45 = vpop.f32.mrb[4].mxu1 }
 0x1c4   :  { %v1863_v40 = vpop.f32.mrb[7].mxu0  ;;  %v1882_v46 = vpop.f32.mrb[5].mxu1 }
 0x1c5   :  { %v1397_v47 = vadd.f32 %v1861_v43, %v1714_v41  ;;  %v1883_v48 = vadd.f32 %v1882_v46, %v1881_v45  ;;  %v1884_v49 = vpop.f32.mrb[6].mxu1 }
 0x1c6   :  { %v1885_v50 = vpop.f32.mrb[7].mxu1 }
 0x1c7   :  { %v1437_v51 = vadd.f32 %v1883_v48, %v1397_v47 }
 0x1e1   :  { %v1903_v52 = vpop.f32.mrb[8].mxu0 }
 0x1e2   :  { %v1904_v13 = vpop.f32.mrb[9].mxu0 }
 0x1e3   :  { %v1905_v53 = vadd.f32 %v1904_v13, %v1903_v52  ;;  %v1906_v23 = vpop.f32.mrb[10].mxu0  ;;  %v1925_v54 = vpop.f32.mrb[8].mxu1 }
 0x1e4   :  { %v1907_v55 = vpop.f32.mrb[11].mxu0  ;;  %v1926_v56 = vpop.f32.mrb[9].mxu1 }
 0x1e5   :  { %v1477_v57 = vadd.f32 %v1905_v53, %v1437_v51  ;;  %v1927_v58 = vadd.f32 %v1926_v56, %v1925_v54  ;;  %v1928_v59 = vpop.f32.mrb[10].mxu1 }
 0x1e6   :  { %v1929_v60 = vpop.f32.mrb[11].mxu1 }
 0x1e7   :  { %v1517_v61 = vadd.f32 %v1927_v58, %v1477_v57 }
 0x201   :  { %v1947_v62 = vpop.f32.mrb[12].mxu0 }
 0x202   :  { %v1948_v63 = vpop.f32.mrb[13].mxu0 }
 0x203   :  { %v1949_v0 = vadd.f32 %v1948_v63, %v1947_v62  ;;  %v1950_v1 = vpop.f32.mrb[14].mxu0  ;;  %v1969_v2 = vpop.f32.mrb[12].mxu1 }
 0x204   :  { %v1951_v3 = vpop.f32.mrb[15].mxu0  ;;  %v1970_v4 = vpop.f32.mrb[13].mxu1 }
 0x205   :  { %v1557_v9 = vadd.f32 %v1949_v0, %v1517_v61  ;;  %v1971_v12 = vadd.f32 %v1970_v4, %v1969_v2  ;;  %v1972_v14 = vpop.f32.mrb[14].mxu1 }
 0x206   :  { %v1973_v16 = vpop.f32.mrb[15].mxu1 }
 0x207   :  { %v1597_v17 = vadd.f32 %v1971_v12, %v1557_v9 }
 0x221   :  { %v1991_v18 = vpop.f32.mrb[16].mxu0 }
 0x222   :  { %v1992_v6 = vpop.f32.mrb[17].mxu0 }
 0x223   :  { %v1993_v7 = vadd.f32 %v1992_v6, %v1991_v18  ;;  %v1994_v5 = vpop.f32.mrb[18].mxu0  ;;  %v2013_v8 = vpop.f32.mrb[16].mxu1 }
 0x224   :  { %v1995_v15 = vpop.f32.mrb[19].mxu0  ;;  %v2014_v19 = vpop.f32.mrb[17].mxu1 }
 0x225   :  { %v1637_v20 = vadd.f32 %v1993_v7, %v1597_v17  ;;  %v2015_v21 = vadd.f32 %v2014_v19, %v2013_v8  ;;  %v2016_v11 = vpop.f32.mrb[18].mxu1 }
 0x226   :  { %v2017_v22 = vpop.f32.mrb[19].mxu1 }
 0x227   :  { %v1677_v24 = vadd.f32 %v2015_v21, %v1637_v20 }
 0x229   :  { %1683 = vst.msk [vmem:[#allocation2] sm:$0x3] %vm1682_vm5, %v1677_v24 }
 0x22a   :  { %2177 = shalt.err (!%p2174_p4)
}
 0x22b   :  { %s2178_s24 = scalar_lea.hbm %s2784_s5, 32 }
 0x22c   :  { %p2179_p5 = scmp.ne.s32.totalorder %s2784_s5, %s2178_s24  ;;  %p2182_p6 = scmp.lt.u32.totalorder %s2178_s24, %s2784_s5 }
 0x22e   :  { %p2184_p7 = pnand %p2182_p6, %p2179_p5 }
 0x230   :  { %2187 = shalt.err (!%p2184_p7)
}
 0x231   :  { %1693 = dma.vmem_to_hbm [thread:$0]  %s1691_s4, 32, %s2784_s5, [#allocation3]  }
 0x232   :  { %2188 = dma.done.wait [#allocation3], 32  }
 0x233   :  { %2189 = vsyncadd [#allocation3], 4294967264 }
 0x234   :  { %1697 = vsyncpa [#allocation3], 1 }

</bundles_post_ra>
